<compile_context>
chip_gen: v7x
topology: tpu7x:2x2x1
jax: 0.10.0
libtpu: 0.0.40
codegen_flags: <defaults>
</compile_context>

<pallas_src>
import jax
import jax.numpy as jnp
from jax.experimental import pallas as pl
from jax.experimental.pallas import tpu as pltpu


def mav_kernel(x_ref, w1_ref, b1_ref, w2_ref, b2_ref, out_ref, acc_ref):
    k = pl.program_id(1)

    @pl.when(k == 0)
    def _():
        acc_ref[...] = jnp.zeros_like(acc_ref)

    tk = x_ref.shape[1]

    # tanh in f32 (v5e has no bf16 VPU/EUP); matmul in f32 — the kernel is
    # HBM-bound, so avoiding per-vreg casts beats chasing the bf16 MXU path.
    # TODO(synk): nn.Dropout is identity in eval mode; training-mode dropout
    # (stochastic masking via pltpu.prng_*) is not implemented.
    x = jnp.tanh(x_ref[...].astype(jnp.float32))

    if w1_ref.shape[0] == tk:
        # W1 streamed one (tk, H) tile per k-step.
        w1_blk = w1_ref[...]
    else:
        # W1 fully resident in VMEM: slice the current k-chunk in-kernel.
        start = pl.multiple_of(k * tk, 128)
        w1_blk = w1_ref[pl.ds(start, tk), :]

    acc_ref[...] += jnp.dot(x, w1_blk.astype(jnp.float32),
                            preferred_element_type=jnp.float32)

    @pl.when(k == pl.num_programs(1) - 1)
    def _():
        h = jnp.tanh(acc_ref[...] + b1_ref[...])
        logits = jnp.dot(h, w2_ref[...].astype(jnp.float32),
                         preferred_element_type=jnp.float32)
        out_ref[...] = (logits + b2_ref[...]).astype(out_ref.dtype)


def _round_up(x, m):
    return (x + m - 1) // m * m


def mav_forward(features, w1, b1, w2, b2, *, tb=512, tk=2048):
    """features: [B, V]; w1: [V, H]; b1: [H]; w2: [H, L]; b2: [L] -> f32 [B, L]."""
    B, V = features.shape
    H = w1.shape[1]
    L = w2.shape[1]

    LP = _round_up(L, 128)  # lane-dense output store

    # Batch tile: sublane granularity (8 rows f32, 16 rows for 16-bit inputs).
    # Keep >= 2 batch tiles when the batch allows so v7x's two TensorCores
    # both get work via the "parallel" batch axis.
    row_g = 16 if jnp.dtype(features.dtype).itemsize == 2 else 8
    tb = min(tb, _round_up(B, row_g))
    if B >= 2 * row_g:
        tb = min(tb, _round_up((B + 1) // 2, row_g))
    BP = _round_up(B, tb)

    tk = min(tk, _round_up(V, 128))
    VP = _round_up(V, tk)

    # Only materialize padded copies when the tiling actually needs them
    # (zero padding is exact: tanh(0)=0 and zero W1 rows contribute nothing).
    x_p = features
    if (BP, VP) != (B, V):
        x_p = jnp.zeros((BP, VP), features.dtype).at[:B, :V].set(features)

    w1_p = w1  # native [V, H] layout, native dtype — no H->128 padding
    if VP != V:
        w1_p = jnp.zeros((VP, H), w1.dtype).at[:V, :].set(w1)

    b1_p = b1.astype(jnp.float32).reshape(1, H)
    w2_p = jnp.zeros((H, LP), jnp.float32).at[:, :L].set(w2.astype(jnp.float32))
    b2_p = jnp.zeros((1, LP), jnp.float32).at[0, :L].set(b2.astype(jnp.float32))

    num_b = BP // tb
    num_k = VP // tk

    # W1 residency: fetch once from HBM and reuse across all batch tiles when
    # it comfortably fits VMEM (lane-padded layout) and is actually reused.
    w1_isz = jnp.dtype(w1_p.dtype).itemsize
    w1_resident_bytes = VP * _round_up(H, 128) * w1_isz
    w1_resident = (num_b > 1) and (num_k > 1) and (w1_resident_bytes <= 6 * 1024 * 1024)
    if w1_resident:
        w1_spec = pl.BlockSpec((VP, H), lambda i, k: (0, 0))
        w1_buf_bytes = w1_resident_bytes
    else:
        w1_spec = pl.BlockSpec((tk, H), lambda i, k: (k, 0))
        w1_buf_bytes = tk * _round_up(H, 128) * w1_isz

    # VMEM budget (double-buffered inputs/outputs, lane-padded widths) with
    # 2x headroom, capped by the chip's real VMEM capacity (v7x = 64 MiB).
    x_isz = jnp.dtype(x_p.dtype).itemsize
    vmem_bytes = (2 * tb * tk * x_isz                      # features tiles
                  + 2 * w1_buf_bytes                       # W1
                  + 2 * tb * LP * 4                        # output tile
                  + 2 * 8 * _round_up(H, 128) * 4          # b1
                  + 2 * _round_up(H, 8) * LP * 4           # W2
                  + 2 * 8 * LP * 4                         # b2
                  + tb * _round_up(H, 128) * 4)            # accumulator scratch
    try:
        vmem_cap = int(pltpu.get_tpu_info().vmem_capacity_bytes)
    except Exception:
        vmem_cap = 64 * 1024 * 1024  # v7x physical VMEM (smallest generation)
    vmem_limit = int(min(max(2 * vmem_bytes, 16 * 1024 * 1024),
                         int(0.75 * vmem_cap)))

    out = pl.pallas_call(
        mav_kernel,
        out_shape=jax.ShapeDtypeStruct((BP, LP), jnp.float32),
        grid_spec=pltpu.PrefetchScalarGridSpec(
            num_scalar_prefetch=0,
            grid=(num_b, num_k),
            in_specs=[
                pl.BlockSpec((tb, tk), lambda i, k: (i, k)),   # features
                w1_spec,                                       # W1 [*, H]
                pl.BlockSpec((1, H), lambda i, k: (0, 0)),     # b1 (resident)
                pl.BlockSpec((H, LP), lambda i, k: (0, 0)),    # W2 (resident)
                pl.BlockSpec((1, LP), lambda i, k: (0, 0)),    # b2 (resident)
            ],
            out_specs=pl.BlockSpec((tb, LP), lambda i, k: (i, 0)),
            scratch_shapes=[pltpu.VMEM((tb, H), jnp.float32)],
        ),
        compiler_params=pltpu.CompilerParams(
            dimension_semantics=("parallel", "arbitrary"),
            vmem_limit_bytes=vmem_limit),
    )(x_p, w1_p, b1_p, w2_p, b2_p)

    return out[:B, :L]


def mav_reference(features, w1, b1, w2, b2):
    x = jnp.tanh(features.astype(jnp.float32))
    x = x @ w1.astype(jnp.float32) + b1
    x = jnp.tanh(x)
    return x @ w2.astype(jnp.float32) + b2


if __name__ == "__main__":
    # Small, deterministic config.
    B = 8            # batch
    VOCAB = 512      # config.vocab_size
    HIDDEN = 32      # config.mav_hidden_dim
    NUM_LABELS = 4   # config.num_labels

    key = jax.random.PRNGKey(0)
    k_x, k_w1, k_b1, k_w2, k_b2 = jax.random.split(key, 5)

    features = jax.random.normal(k_x, (B, VOCAB), dtype=jnp.float32)
    # nn.Linear(vocab_size, hidden): weight [H, V] -> stored transposed as [V, H]
    w1 = jax.random.normal(k_w1, (VOCAB, HIDDEN), dtype=jnp.float32) * 0.02
    b1 = jax.random.normal(k_b1, (HIDDEN,), dtype=jnp.float32) * 0.02
    # nn.Linear(hidden, num_labels): weight [L, H] -> stored transposed as [H, L]
    w2 = jax.random.normal(k_w2, (HIDDEN, NUM_LABELS), dtype=jnp.float32) * 0.02
    b2 = jax.random.normal(k_b2, (NUM_LABELS,), dtype=jnp.float32) * 0.02

    out = mav_forward(features, w1, b1, w2, b2)
    out = jax.block_until_ready(out)

    ref = mav_reference(features, w1, b1, w2, b2)
    assert out.shape == (B, NUM_LABELS)
    assert out.dtype == jnp.float32
    # Default-precision f32 MXU rounding on the V-reduction dominates the error.
    assert jnp.allclose(out, ref, atol=1e-2, rtol=1e-2)

    print("KERNEL_OK")
</pallas_src>

<mosaic_0001>
module attributes {stable_mosaic.version = 11 : i64} {
  func.func @mav_kernel(%arg0: i32, %arg1: i32, %arg2: memref<8x512xf32, #tpu.memory_space<vmem>>, %arg3: memref<512x32xf32, #tpu.memory_space<vmem>>, %arg4: memref<1x32xf32, #tpu.memory_space<vmem>>, %arg5: memref<32x128xf32, #tpu.memory_space<vmem>>, %arg6: memref<1x128xf32, #tpu.memory_space<vmem>>, %arg7: memref<8x128xf32, #tpu.memory_space<vmem>>, %arg8: memref<8x32xf32, #tpu.memory_space<vmem>>) attributes {dimension_semantics = [#tpu.dimension_semantics<parallel>, #tpu.dimension_semantics<arbitrary>], iteration_bounds = array<i64: 1, 1>, scalar_prefetch = 0 : i64, scratch_operands = 1 : i64, tpu.core_type = #tpu.core_type<tc>, window_params = [{transform_indices = @transform_0, window_bounds = array<i64: 8, 512>}, {transform_indices = @transform_1, window_bounds = array<i64: 512, 32>}, {pipeline_mode = #tpu.pipeline_mode<synchronous>, transform_indices = @transform_2, window_bounds = array<i64: 1, 32>}, {pipeline_mode = #tpu.pipeline_mode<synchronous>, transform_indices = @transform_3, window_bounds = array<i64: 32, 128>}, {pipeline_mode = #tpu.pipeline_mode<synchronous>, transform_indices = @transform_4, window_bounds = array<i64: 1, 128>}, {transform_indices = @transform_5, window_bounds = array<i64: 8, 128>}]} {
    %c0_i32 = arith.constant 0 : i32
    %0 = arith.cmpi eq, %arg1, %c0_i32 : i32
    %1 = arith.extui %0 : i1 to i32
    %c0_i32_0 = arith.constant 0 : i32
    %2 = arith.cmpi ne, %1, %c0_i32_0 : i32
    scf.if %2 {
      %cst_10 = arith.constant 0.000000e+00 : f32
      %13 = vector.broadcast %cst_10 : f32 to vector<8x32xf32>
      %c0_11 = arith.constant 0 : index
      %c0_12 = arith.constant 0 : index
      %14 = vector.load %arg8[%c0_11, %c0_12] : memref<8x32xf32, #tpu.memory_space<vmem>>, vector<8x32xf32>
      tpu.vector_store %arg8[%c0_11, %c0_12], %13 {strides = array<i32>} : memref<8x32xf32, #tpu.memory_space<vmem>>, vector<8x32xf32>,
    } else {
    }
    %c0 = arith.constant 0 : index
    %c0_1 = arith.constant 0 : index
    %3 = vector.load %arg2[%c0, %c0_1] : memref<8x512xf32, #tpu.memory_space<vmem>>, vector<8x512xf32>
    %4 = math.tanh %3 : vector<8x512xf32>
    %c0_2 = arith.constant 0 : index
    %c0_3 = arith.constant 0 : index
    %5 = vector.load %arg3[%c0_2, %c0_3] : memref<512x32xf32, #tpu.memory_space<vmem>>, vector<512x32xf32>
    %c0_4 = arith.constant 0 : index
    %c0_5 = arith.constant 0 : index
    %6 = vector.load %arg8[%c0_4, %c0_5] : memref<8x32xf32, #tpu.memory_space<vmem>>, vector<8x32xf32>
    %cst = arith.constant dense<0.000000e+00> : vector<8x32xf32>
    %7 = tpu.matmul %4, %5, %cst {dimension_numbers = #tpu.dot_dimension_numbers<[1], [0], [0], [1], [0, 0, 1, 1], [], []>} : vector<8x512xf32>, vector<512x32xf32>, vector<8x32xf32> -> vector<8x32xf32>
    %8 = arith.addf %6, %7 : vector<8x32xf32>
    %c0_6 = arith.constant 0 : index
    %c0_7 = arith.constant 0 : index
    %9 = vector.load %arg8[%c0_6, %c0_7] : memref<8x32xf32, #tpu.memory_space<vmem>>, vector<8x32xf32>
    tpu.vector_store %arg8[%c0_6, %c0_7], %8 {strides = array<i32>} : memref<8x32xf32, #tpu.memory_space<vmem>>, vector<8x32xf32>,
    %c0_i32_8 = arith.constant 0 : i32
    %10 = arith.cmpi eq, %arg1, %c0_i32_8 : i32
    %11 = arith.extui %10 : i1 to i32
    %c0_i32_9 = arith.constant 0 : i32
    %12 = arith.cmpi ne, %11, %c0_i32_9 : i32
    scf.if %12 {
      %c0_10 = arith.constant 0 : index
      %c0_11 = arith.constant 0 : index
      %13 = vector.load %arg8[%c0_10, %c0_11] : memref<8x32xf32, #tpu.memory_space<vmem>>, vector<8x32xf32>
      %c0_12 = arith.constant 0 : index
      %c0_13 = arith.constant 0 : index
      %14 = vector.load %arg4[%c0_12, %c0_13] : memref<1x32xf32, #tpu.memory_space<vmem>>, vector<1x32xf32>
      %15 = vector.broadcast %14 : vector<1x32xf32> to vector<8x32xf32>
      %16 = arith.addf %13, %15 : vector<8x32xf32>
      %17 = math.tanh %16 : vector<8x32xf32>
      %c0_14 = arith.constant 0 : index
      %c0_15 = arith.constant 0 : index
      %18 = vector.load %arg5[%c0_14, %c0_15] : memref<32x128xf32, #tpu.memory_space<vmem>>, vector<32x128xf32>
      %cst_16 = arith.constant dense<0.000000e+00> : vector<8x128xf32>
      %19 = tpu.matmul %17, %18, %cst_16 {dimension_numbers = #tpu.dot_dimension_numbers<[1], [0], [0], [1], [0, 0, 1, 1], [], []>} : vector<8x32xf32>, vector<32x128xf32>, vector<8x128xf32> -> vector<8x128xf32>
      %c0_17 = arith.constant 0 : index
      %c0_18 = arith.constant 0 : index
      %20 = vector.load %arg6[%c0_17, %c0_18] : memref<1x128xf32, #tpu.memory_space<vmem>>, vector<1x128xf32>
      %21 = vector.broadcast %20 : vector<1x128xf32> to vector<8x128xf32>
      %22 = arith.addf %19, %21 : vector<8x128xf32>
      %c0_19 = arith.constant 0 : index
      %c0_20 = arith.constant 0 : index
      %23 = vector.load %arg7[%c0_19, %c0_20] : memref<8x128xf32, #tpu.memory_space<vmem>>, vector<8x128xf32>
      tpu.vector_store %arg7[%c0_19, %c0_20], %22 {strides = array<i32>} : memref<8x128xf32, #tpu.memory_space<vmem>>, vector<8x128xf32>,
    } else {
    }
    return
  }
  func.func @transform_0(%arg0: i32, %arg1: i32) -> (i32, i32) {
    %c0_i32 = arith.constant 0 : i32
    return %arg0, %arg1 : i32, i32
  }
  func.func @transform_1(%arg0: i32, %arg1: i32) -> (i32, i32) {
    %c0_i32 = arith.constant 0 : i32
    %c0_i32_0 = arith.constant 0 : i32
    return %arg1, %c0_i32 : i32, i32
  }
  func.func @transform_2(%arg0: i32, %arg1: i32) -> (i32, i32) {
    %c0_i32 = arith.constant 0 : i32
    %c0_i32_0 = arith.constant 0 : i32
    %c0_i32_1 = arith.constant 0 : i32
    return %c0_i32, %c0_i32_0 : i32, i32
  }
  func.func @transform_3(%arg0: i32, %arg1: i32) -> (i32, i32) {
    %c0_i32 = arith.constant 0 : i32
    %c0_i32_0 = arith.constant 0 : i32
    %c0_i32_1 = arith.constant 0 : i32
    return %c0_i32, %c0_i32_0 : i32, i32
  }
  func.func @transform_4(%arg0: i32, %arg1: i32) -> (i32, i32) {
    %c0_i32 = arith.constant 0 : i32
    %c0_i32_0 = arith.constant 0 : i32
    %c0_i32_1 = arith.constant 0 : i32
    return %c0_i32, %c0_i32_0 : i32, i32
  }
  func.func @transform_5(%arg0: i32, %arg1: i32) -> (i32, i32) {
    %c0_i32 = arith.constant 0 : i32
    %c0_i32_0 = arith.constant 0 : i32
    return %arg0, %c0_i32 : i32, i32
  }
}

</mosaic_0001>

<bundles_post_ra>
// kernel: tpu_custom_call.1
= control target key start
LH: loop header
LB: loop body
LE: loop exit
PB: predicated region body
PF: predicated region fallthrough
CT: control target
= control target key end

     0   :  { %s823_s0 = inlined_call_operand.vmem [shape: f32[8,512], index: 0, kind: input, shape index: {}]   ;;  %s824_s1 = inlined_call_operand.vmem [shape: f32[512,32], index: 1, kind: input, shape index: {}]   ;;  %s825_s2 = inlined_call_operand.vmem [shape: f32[1,32], index: 2, kind: input, shape index: {}]   ;;  %s826_s3 = inlined_call_operand.vmem [shape: f32[32,128], index: 3, kind: input, shape index: {}]   ;;  %s827_s4 = inlined_call_operand.vmem [shape: f32[1,128], index: 4, kind: input, shape index: {}]   ;;  %s828_s5 = inlined_call_operand.hbm [shape: f32[8,128], index: 5, kind: output, shape index: {}]  }
   0x1   :  { %v51_v0 = vld [vmem:[%s824_s1 + $0x80] sm:$0xff]  ;;  %v52_v1 = vld [vmem:[%s824_s1 + $0x88] sm:$0xff]  ;;  %v53_v11 = vld [vmem:[%s824_s1 + $0x90] sm:$0xff] }
   0x2   :  { %v83_v2 = vld [vmem:[%s824_s1 + $0x180] sm:$0xff]  ;;  %v444_v3 = vpack.c.bf16 %v52_v1, %v51_v0  ;;  %v84_v4 = vld [vmem:[%s824_s1 + $0x188] sm:$0xff]  ;;  %v54_v13 = vld [vmem:[%s824_s1 + $0x98] sm:$0xff] }
   0x3   :  { %v35_v5 = vld [vmem:[%s824_s1] sm:$0xff]  ;;  %v36_v6 = vld [vmem:[%s824_s1 + $0x8] sm:$0xff]  ;;  %v476_v7 = vpack.c.bf16 %v84_v4, %v83_v2  ;;  %v85_v14 = vld [vmem:[%s824_s1 + $0x190] sm:$0xff]  ;;  %v448_v16 = vpack.c.bf16 %v54_v13, %v53_v11 }
   0x4   :  { %v446_v8 = vpack.c.bf16 %v36_v6, %v35_v5  ;;  %v67_v9 = vld [vmem:[%s824_s1 + $0x100] sm:$0xff]  ;;  %v68_v10 = vld [vmem:[%s824_s1 + $0x108] sm:$0xff]  ;;  %445 = vmatprep.subr.bf16.mxu0 %v444_v3  ;;  %v86_v15 = vld [vmem:[%s824_s1 + $0x198] sm:$0xff] }
   0x5   :  { %v478_v12 = vpack.c.bf16 %v68_v10, %v67_v9  ;;  %477 = vmatprep.subr.bf16.mxu1 %v476_v7  ;;  %v480_v17 = vpack.c.bf16 %v86_v15, %v85_v14  ;;  %v37_v18 = vld [vmem:[%s824_s1 + $0x10] sm:$0xff]  ;;  %v38_v19 = vld [vmem:[%s824_s1 + $0x18] sm:$0xff]  ;;  %v55_v23 = vld [vmem:[%s824_s1 + $0xa0] sm:$0xff] }
   0x6   :  { %447 = vmatpush3.bf16.msra.mxu0 %v446_v8  ;;  %v69_v20 = vld [vmem:[%s824_s1 + $0x110] sm:$0xff]  ;;  %v450_v21 = vpack.c.bf16 %v38_v19, %v37_v18  ;;  %v70_v22 = vld [vmem:[%s824_s1 + $0x118] sm:$0xff]  ;;  %v56_v24 = vld [vmem:[%s824_s1 + $0xa8] sm:$0xff] }
   0x7   :  { %479 = vmatpush3.bf16.msra.mxu1 %v478_v12  ;;  %449 = vmatprep.subr.bf16.mxu0 %v448_v16  ;;  %v482_v25 = vpack.c.bf16 %v70_v22, %v69_v20  ;;  %v452_v26 = vpack.c.bf16 %v56_v24, %v55_v23  ;;  %v87_v27 = vld [vmem:[%s824_s1 + $0x1a0] sm:$0xff]  ;;  %v88_v28 = vld [vmem:[%s824_s1 + $0x1a8] sm:$0xff]  ;;  %v57_v35 = vld [vmem:[%s824_s1 + $0xb0] sm:$0xff] }
   0x8   :  { %481 = vmatprep.subr.bf16.mxu1 %v480_v17  ;;  %v39_v29 = vld [vmem:[%s824_s1 + $0x20] sm:$0xff]  ;;  %v484_v30 = vpack.c.bf16 %v88_v28, %v87_v27  ;;  %v40_v31 = vld [vmem:[%s824_s1 + $0x28] sm:$0xff]  ;;  %v58_v36 = vld [vmem:[%s824_s1 + $0xb8] sm:$0xff] }
   0x9   :  { %v71_v32 = vld [vmem:[%s824_s1 + $0x120] sm:$0xff]  ;;  %v72_v33 = vld [vmem:[%s824_s1 + $0x128] sm:$0xff]  ;;  %v454_v34 = vpack.c.bf16 %v40_v31, %v39_v29  ;;  %v89_v37 = vld [vmem:[%s824_s1 + $0x1b0] sm:$0xff]  ;;  %v456_v39 = vpack.c.bf16 %v58_v36, %v57_v35 }
   0xa   :  { %451 = vmatpush3.bf16.msra.mxu0 %v450_v21  ;;  %v486_v38 = vpack.c.bf16 %v72_v33, %v71_v32  ;;  %v90_v40 = vld [vmem:[%s824_s1 + $0x1b8] sm:$0xff]  ;;  %v41_v41 = vld [vmem:[%s824_s1 + $0x30] sm:$0xff]  ;;  %v59_v46 = vld [vmem:[%s824_s1 + $0xc0] sm:$0xff] }
   0xb   :  { %483 = vmatpush3.bf16.msra.mxu1 %v482_v25  ;;  %453 = vmatprep.subr.bf16.mxu0 %v452_v26  ;;  %v42_v42 = vld [vmem:[%s824_s1 + $0x38] sm:$0xff]  ;;  %v488_v43 = vpack.c.bf16 %v90_v40, %v89_v37  ;;  %v73_v44 = vld [vmem:[%s824_s1 + $0x130] sm:$0xff]  ;;  %v60_v47 = vld [vmem:[%s824_s1 + $0xc8] sm:$0xff] }
   0xc   :  { %485 = vmatprep.subr.bf16.mxu1 %v484_v30  ;;  %v74_v45 = vld [vmem:[%s824_s1 + $0x138] sm:$0xff]  ;;  %v91_v48 = vld [vmem:[%s824_s1 + $0x1c0] sm:$0xff]  ;;  %v92_v49 = vld [vmem:[%s824_s1 + $0x1c8] sm:$0xff]  ;;  %v458_v50 = vpack.c.bf16 %v42_v42, %v41_v41  ;;  %v460_v52 = vpack.c.bf16 %v60_v47, %v59_v46 }
   0xd   :  { %v490_v51 = vpack.c.bf16 %v74_v45, %v73_v44  ;;  %v43_v53 = vld [vmem:[%s824_s1 + $0x40] sm:$0xff]  ;;  %v44_v54 = vld [vmem:[%s824_s1 + $0x48] sm:$0xff]  ;;  %v492_v56 = vpack.c.bf16 %v92_v49, %v91_v48  ;;  %v61_v58 = vld [vmem:[%s824_s1 + $0xd0] sm:$0xff] }
   0xe   :  { %455 = vmatpush3.bf16.msra.mxu0 %v454_v34  ;;  %v75_v55 = vld [vmem:[%s824_s1 + $0x140] sm:$0xff]  ;;  %v76_v57 = vld [vmem:[%s824_s1 + $0x148] sm:$0xff]  ;;  %v62_v59 = vld [vmem:[%s824_s1 + $0xd8] sm:$0xff]  ;;  %v462_v62 = vpack.c.bf16 %v44_v54, %v43_v53 }
   0xf   :  { %487 = vmatpush3.bf16.msra.mxu1 %v486_v38  ;;  %457 = vmatprep.subr.bf16.mxu0 %v456_v39  ;;  %v93_v60 = vld [vmem:[%s824_s1 + $0x1d0] sm:$0xff]  ;;  %v94_v61 = vld [vmem:[%s824_s1 + $0x1d8] sm:$0xff]  ;;  %v494_v0 = vpack.c.bf16 %v76_v57, %v75_v55  ;;  %v464_v1 = vpack.c.bf16 %v62_v59, %v61_v58  ;;  %v63_v6 = vld [vmem:[%s824_s1 + $0xe0] sm:$0xff] }
  0x10   :  { %489 = vmatprep.subr.bf16.mxu1 %v488_v43  ;;  %v45_v63 = vld [vmem:[%s824_s1 + $0x50] sm:$0xff]  ;;  %v46_v2 = vld [vmem:[%s824_s1 + $0x58] sm:$0xff]  ;;  %v496_v5 = vpack.c.bf16 %v94_v61, %v93_v60  ;;  %v64_v7 = vld [vmem:[%s824_s1 + $0xe8] sm:$0xff] }
  0x11   :  { %v77_v3 = vld [vmem:[%s824_s1 + $0x150] sm:$0xff]  ;;  %v78_v4 = vld [vmem:[%s824_s1 + $0x158] sm:$0xff]  ;;  %v95_v8 = vld [vmem:[%s824_s1 + $0x1e0] sm:$0xff]  ;;  %v466_v12 = vpack.c.bf16 %v46_v2, %v45_v63  ;;  %v468_v17 = vpack.c.bf16 %v64_v7, %v63_v6 }
  0x12   :  { %459 = vmatpush3.bf16.msra.mxu0 %v458_v50  ;;  %v96_v9 = vld [vmem:[%s824_s1 + $0x1e8] sm:$0xff]  ;;  %v47_v10 = vld [vmem:[%s824_s1 + $0x60] sm:$0xff]  ;;  %v65_v15 = vld [vmem:[%s824_s1 + $0xf0] sm:$0xff]  ;;  %v498_v16 = vpack.c.bf16 %v78_v4, %v77_v3 }
  0x13   :  { %491 = vmatpush3.bf16.msra.mxu1 %v490_v51  ;;  %461 = vmatprep.subr.bf16.mxu0 %v460_v52  ;;  %v48_v11 = vld [vmem:[%s824_s1 + $0x68] sm:$0xff]  ;;  %v79_v13 = vld [vmem:[%s824_s1 + $0x160] sm:$0xff]  ;;  %v66_v18 = vld [vmem:[%s824_s1 + $0xf8] sm:$0xff]  ;;  %v500_v21 = vpack.c.bf16 %v96_v9, %v95_v8 }
  0x14   :  { %493 = vmatprep.subr.bf16.mxu1 %v492_v56  ;;  %v80_v14 = vld [vmem:[%s824_s1 + $0x168] sm:$0xff]  ;;  %v30_v20 = vld [vmem:[%s823_s0 + $0x18] sm:$0xff]  ;;  %v27_v22 = vld [vmem:[%s823_s0] sm:$0xff] }
  0x15   :  { %v28_v19 = vld [vmem:[%s823_s0 + $0x8] sm:$0xff]  ;;  %v29_v23 = vld [vmem:[%s823_s0 + $0x10] sm:$0xff] }
  0x16   :  { %463 = vmatpush3.bf16.msra.mxu0 %v462_v62  ;;  %518 = vtanh.f32 %v28_v19 }
  0x17   :  { %495 = vmatpush3.bf16.msra.mxu1 %v494_v0  ;;  %465 = vmatprep.subr.bf16.mxu0 %v464_v1 }
  0x18   :  { %497 = vmatprep.subr.bf16.mxu1 %v496_v5 }
  0x19   :  { %10 = vsyncpa [#allocation4], 0  ;;  %v97_v24 = vld [vmem:[%s824_s1 + $0x1f0] sm:$0xff]  ;;  %v98_v25 = vld [vmem:[%s824_s1 + $0x1f8] sm:$0xff]  ;;  %520 = vtanh.f32 %v30_v20  ;;  %v470_v26 = vpack.c.bf16 %v48_v11, %v47_v10  ;;  %v502_v27 = vpack.c.bf16 %v80_v14, %v79_v13  ;;  %v472_v28 = vpack.c.bf16 %v66_v18, %v65_v15  ;;  %s555_s13 = smov [#allocation3]  }
  0x1a   :  { %467 = vmatpush3.bf16.msra.mxu0 %v466_v12  ;;  %522 = vtanh.f32 %v27_v22  ;;  %v49_v29 = vld [vmem:[%s824_s1 + $0x70] sm:$0xff]  ;;  %v50_v30 = vld [vmem:[%s824_s1 + $0x78] sm:$0xff]  ;;  %v504_v31 = vpack.c.bf16 %v98_v25, %v97_v24  ;;  %vm25_vm0 = vcmask 261120   ;;  %v552_v40 = vmov 0.0   ;;  %v256_v41 = vld [vmem:[%s826_s3] sm:$0xff]  ;;  %s347_s14 = sshll.u32 %s555_s13, 4  ;;  %s348_s14 = int_to_ptr.vmem [resolvable:$true] %s347_s14 }
  0x1b   :  { %499 = vmatpush3.bf16.msra.mxu1 %v498_v16  ;;  %469 = vmatprep.subr.bf16.mxu0 %v468_v17  ;;  %524 = vtanh.f32 %v29_v23  ;;  %v81_v32 = vld [vmem:[%s824_s1 + $0x170] sm:$0xff]  ;;  %v82_v33 = vld [vmem:[%s824_s1 + $0x178] sm:$0xff]  ;;  %v474_v34 = vpack.c.bf16 %v50_v30, %v49_v29  ;;  %26 = vst.msk [vmem:[#allocation2] sm:$0xff] %vm25_vm0, %v552_v40  ;;  %v257_v42 = vld [vmem:[%s826_s3 + $0x8] sm:$0xff]  ;;  %v553_v44 = vmov 0.0|0.0   ;;  %vm554_vm1 = vmmov 0   ;;  %p533_p1 = scmp.lt.s32.totalorder %s348_s14, %s348_s14 }
  0x1c   :  { %501 = vmatprep.subr.bf16.mxu1 %v500_v21  ;;  %v506_v35 = vpack.c.bf16 %v82_v33, %v81_v32  ;;  %v258_v43 = vld [vmem:[%s826_s3 + $0x10] sm:$0xff]  ;;  %v509_v45 = vpack.c.bf16 %v257_v42, %v256_v41  ;;  %v259_v46 = vld [vmem:[%s826_s3 + $0x18] sm:$0xff]  ;;  %v355_v57 = vld [vmem:[%s825_s2] ss:$0 sm:$0xff]  ;;  %s528_s15 = scalar_lea.vmem %s348_s14, 128 }
  0x1d   :  { %v512_v47 = vpack.c.bf16 %v259_v46, %v258_v43  ;;  %v356_v61 = vld [vmem:[%s827_s4] ss:$0 sm:$0xff]  ;;  %p529_p0 = scmp.ne.s32.totalorder %s348_s14, %s528_s15  ;;  %p534_p2 = scmp.lt.s32.totalorder %s528_s15, %s528_s15 }
  0x1e   :  { %471 = vmatpush3.bf16.msra.mxu0 %v470_v26 }
  0x1f   :  { %503 = vmatpush3.bf16.msra.mxu1 %v502_v27  ;;  %473 = vmatprep.subr.bf16.mxu0 %v472_v28  ;;  %p535_p3 = por %p534_p2, %p533_p1 }
  0x20   :  { %505 = vmatprep.subr.bf16.mxu1 %v504_v31  ;;  %v519_v36 = vpop.eup %518 }
  0x21   :  { %164 = vmatprep.mubr.f32.mxu0 %v519_v36  ;;  %p536_p4 = pnand %p535_p3, %p529_p0 }
  0x22   :  { %475 = vmatpush3.bf16.msra.mxu0 %v474_v34  ;;  %v99_v54 = vld [vmem:[#allocation2] sm:$0xff] }
  0x23   :  { %v521_v37 = vpop.eup %520  ;;  %507 = vmatpush3.bf16.msra.mxu1 %v506_v35  ;;  %508 = vmatprep.subr.bf16.mxu0 %v553_v44 }
  0x24   :  { %v523_v38 = vpop.eup %522  ;;  %234 = vmatprep.mubr.f32.mxu1 %v521_v37 }
  0x25   :  { %v525_v39 = vpop.eup %524  ;;  %165 = vmatmul.mubr.f32.vlgmr.msra.gmra.mrb[0].mxu0 %v523_v38 }
  0x26   :  { %235 = vmatmul.mubr.f32.vlgmr.msra.gmra.mrb[0].mxu1 %v525_v39  ;;  %510 = vmatpush3.bf16.msra.mxu0 %v509_v45 }
  0x27   :  { %511 = vmatprep.subr.bf16.mxu0 %v553_v44  ;;  %441 = vmatprep.mubr.msk.f32.mxu0 %vm554_vm1, %v552_v40 }
  0x2a   :  { %513 = vmatpush3.bf16.msra.mxu0 %v512_v47 }
  0xf8   :  { %v390_v48 = vpop.f32.mrb[0].mxu0 }
  0xf9   :  { %v425_v49 = vpop.f32.mrb[0].mxu1  ;;  %v391_v50 = vpop.f32.mrb[1].mxu0 }
  0xfa   :  { %v392_v51 = vadd.f32 %v391_v50, %v390_v48  ;;  %v426_v52 = vpop.f32.mrb[1].mxu1 }
  0xfb   :  { %v427_v53 = vadd.f32 %v426_v52, %v425_v49 }
  0xfd   :  { %v237_v55 = vadd.f32 %v427_v53, %v392_v51 }
  0xff   :  { %v240_v56 = vadd.f32 %v237_v55, %v99_v54 }
 0x101   :  { %242 = vst.msk [vmem:[#allocation2] sm:$0xff] %vm25_vm0, %v240_v56 }
 0x108   :  { %v246_v58 = vld [vmem:[#allocation2] sm:$0xff] }
 0x109   :  { %v254_v59 = vadd.f32 %v355_v57, %v246_v58 }
 0x10b   :  { %526 = vtanh.f32 %v254_v59 }
 0x115   :  { %v527_v60 = vpop.eup %526 }
 0x116   :  { %442 = vmatmul.mubr.msk.f32.vlgmr.msra.gmra.mrb[2].mxu0 %vm25_vm0, %v527_v60 }
 0x1e9   :  { %v336_v62 = vpop.f32.mrb[2].mxu0 }
 0x1ea   :  { %v337_v63 = vadd.f32 %v356_v61, %v336_v62  ;;  %v443_v0 = vpop.f32.mrb[3].mxu0 }
 0x1ec   :  { %340 = vst [vmem:[#allocation3] sm:$0xff] %v337_v63 }
 0x1ed   :  { %539 = shalt.err (!%p536_p4)
}
 0x1ee   :  { %s540_s17 = scalar_lea.hbm %s828_s5, 128 }
 0x1ef   :  { %p541_p5 = scmp.ne.s32.totalorder %s828_s5, %s540_s17  ;;  %p544_p6 = scmp.lt.u32.totalorder %s540_s17, %s828_s5 }
 0x1f1   :  { %p546_p7 = pnand %p544_p6, %p541_p5 }
 0x1f3   :  { %549 = shalt.err (!%p546_p7)
}
 0x1f4   :  { %350 = dma.vmem_to_hbm [thread:$0]  %s348_s14, 128, %s828_s5, [#allocation4]  }
 0x1f5   :  { %550 = dma.done.wait [#allocation4], 128  }
 0x1f6   :  { %551 = vsyncadd [#allocation4], 4294967168 }
 0x1f7   :  { %354 = vsyncpa [#allocation4], 1 }

</bundles_post_ra>
